<compile_context>
chip_gen: v7x
topology: tpu7x:2x2x1
jax: 0.10.0
libtpu: 0.0.40
codegen_flags: <defaults>
</compile_context>

<pallas_src>
import functools

import jax
import jax.numpy as jnp
from jax.experimental import pallas as pl
from jax.experimental.pallas import tpu as pltpu


# ---------------------------------------------------------------------------
# Small helpers
# ---------------------------------------------------------------------------
def _cdiv(a, b):
    return -(-a // b)


def _vmem_limit_bytes():
    """Generation-aware scoped-VMEM request (leave headroom for buffers/scratch)."""
    try:
        cap = int(pltpu.get_tpu_info().vmem_capacity_bytes)
        return int(min(cap * 3 // 4, 96 * 1024 * 1024))   # 96 MiB v5e/v6e, 48 MiB v7x
    except Exception:
        return 64 * 1024 * 1024                            # safe on every current gen


def _pick_tl(rows_in, rows_out, l_out, budget):
    """Largest lane tile (multiple of 128) whose double-buffered f32 tiles fit."""
    l128 = _cdiv(max(l_out, 1), 128) * 128
    for tl in (2048, 1024, 512, 256, 128):
        if tl > l128:
            continue
        need = 2 * 4 * (rows_in * (tl + 128) + rows_out * tl)   # 2 bufs, f32
        if need <= budget // 2:
            return tl
    return 128


def _x_block_spec(shape, index_map, total_steps):
    """Streamed-x BlockSpec; try a 3-deep pipeline when there is enough grid to hide DMA."""
    if total_steps >= 4:
        try:
            return pl.BlockSpec(shape, index_map, pipeline_mode=pl.Buffered(3))
        except Exception:
            pass
    return pl.BlockSpec(shape, index_map)


# ---------------------------------------------------------------------------
# Kernel 1: one power-iteration step -> 1/sigma and updated u.
# Grid over the d = c_in_g*K axis so wide W_mat never has to fit in VMEM at once.
# Works with the *unnormalized* v (normalization factored into scalar scales).
# ---------------------------------------------------------------------------
def _sigma_kernel(w_ref, u_ref, inv_ref, u_out_ref, wv_acc, nv2_acc):
    j = pl.program_id(0)

    @pl.when(j == 0)
    def _():
        wv_acc[...] = jnp.zeros_like(wv_acc)
        nv2_acc[...] = jnp.zeros_like(nv2_acc)

    w = w_ref[...].astype(jnp.float32)                    # (out_ch, td)
    u = u_ref[...].astype(jnp.float32)                    # (1, out_ch)

    v_j = jnp.dot(u, w, preferred_element_type=jnp.float32)        # (1, td), unnormalized
    nv2_acc[...] += jnp.sum(v_j * v_j, keepdims=True)               # ||v||^2 partial
    wv_acc[...] += jax.lax.dot_general(                              # W @ v (unnormalized)
        v_j, w, (((1,), (1,)), ((), ())), preferred_element_type=jnp.float32)

    @pl.when(j == pl.num_programs(0) - 1)
    def _():
        eps2 = 1e-24                                      # eps**2 with eps = 1e-12
        inv_nv = jax.lax.rsqrt(jnp.maximum(nv2_acc[...], eps2))     # 1/max(||v||, eps)
        wv = wv_acc[...] * inv_nv                         # = W @ normalize(v)
        u_new = wv * jax.lax.rsqrt(jnp.maximum(jnp.sum(wv * wv, keepdims=True), eps2))
        sigma = jnp.sum(u_new * wv, keepdims=True)        # (1, 1)
        inv_ref[...] = 1.0 / sigma                        # exact reciprocal (keeps 1e-5 tol)
        u_out_ref[...] = u_new


def spectral_sigma(w_mat, u):
    """w_mat: (out_ch, d) f32, u: (out_ch,) f32 -> (inv_sigma (1,1) f32, updated u)."""
    out_ch, d = w_mat.shape
    budget = _vmem_limit_bytes()

    if d <= 512 or 2 * out_ch * d * 4 <= budget // 2:
        td, n_d, wp = d, 1, w_mat
    else:
        per_col = 2 * out_ch * 4                          # double-buffered f32 bytes / column
        td = max(128, min((((budget // 2) // per_col) // 128) * 128, 4096))
        n_d = _cdiv(d, td)
        d_pad = n_d * td
        wp = jnp.pad(w_mat, ((0, 0), (0, d_pad - d)))     # zero cols: no effect on v/wv/norms

    inv_sigma, u_new = pl.pallas_call(
        _sigma_kernel,
        out_shape=(jax.ShapeDtypeStruct((1, 1), jnp.float32),
                   jax.ShapeDtypeStruct((1, out_ch), jnp.float32)),
        grid=(n_d,),
        in_specs=[
            pl.BlockSpec((out_ch, td), lambda j: (0, j)),
            pl.BlockSpec((1, out_ch), lambda j: (0, 0)),
        ],
        out_specs=(
            # NOTE: kept as a (1,1) VMEM block (single store per call); the conv kernel
            # consumes it through an SMEM in_spec, so no extra HBM pass either way.
            pl.BlockSpec((1, 1), lambda j: (0, 0)),
            pl.BlockSpec((1, out_ch), lambda j: (0, 0)),
        ),
        scratch_shapes=[pltpu.VMEM((1, out_ch), jnp.float32),
                        pltpu.VMEM((1, 1), jnp.float32)],
        compiler_params=pltpu.CompilerParams(
            dimension_semantics=("arbitrary",), vmem_limit_bytes=budget),
    )(wp, u.reshape(1, out_ch))
    return inv_sigma, u_new.reshape(out_ch)


# ---------------------------------------------------------------------------
# Kernel 2a: direct conv (stride == 1), in-kernel unfold from main tile + 128-col halo.
# ---------------------------------------------------------------------------
def _make_direct_conv_kernel(c_out, c_in_g, k_size, groups, tl, depthwise):
    co_g = c_out // groups

    def kernel(inv_ref, xm_ref, xh_ref, w_ref, b_ref, o_ref):
        inv = inv_ref[0, 0]                                   # SMEM scalar: 1/sigma
        wsf = w_ref[...].astype(jnp.float32) * inv            # pre-scaled weight (tiny)
        b = b_ref[...]                                        # (c_out, 1) f32

        if depthwise:
            # groups == c_in == c_out: pure VPU multiply-accumulate, channels on sublanes.
            win = jnp.concatenate([xm_ref[0], xh_ref[0]], axis=-1)      # (c_out, tl+128)
            acc = jnp.zeros((c_out, tl), jnp.float32)
            for kk in range(k_size):
                acc = acc + wsf[:, kk:kk + 1] * win[:, kk:kk + tl]
            o_ref[0] = (acc + b).astype(o_ref.dtype)
        else:
            ws = wsf.astype(w_ref.dtype)
            for g in range(groups):                            # static unroll over groups
                xm = xm_ref[0, g * c_in_g:(g + 1) * c_in_g, :]           # ref slices (views)
                xh = xh_ref[0, g * c_in_g:(g + 1) * c_in_g, :]
                win = jnp.concatenate([xm, xh], axis=-1)                 # (c_in_g, tl+128)
                acc = jnp.zeros((co_g, tl), jnp.float32)
                for kk in range(k_size):                       # K accumulated MXU matmuls
                    w_gk = ws[g * co_g:(g + 1) * co_g,
                              kk * c_in_g:(kk + 1) * c_in_g]             # (co_g, c_in_g)
                    acc = acc + jnp.dot(w_gk, win[:, kk:kk + tl],
                                        preferred_element_type=jnp.float32)
                o_ref[0, g * co_g:(g + 1) * co_g, :] = (
                    acc + b[g * co_g:(g + 1) * co_g, :]).astype(o_ref.dtype)

    return kernel


# ---------------------------------------------------------------------------
# Kernel 2b: strided fallback on a pre-unfolded (im2col) input, single matmul per group.
# ---------------------------------------------------------------------------
def _make_im2col_kernel(c_out, c_in_g, k_size, groups):
    co_g = c_out // groups
    cik = c_in_g * k_size

    def kernel(inv_ref, x_ref, w_ref, b_ref, o_ref):
        inv = inv_ref[0, 0]
        ws = (w_ref[...].astype(jnp.float32) * inv).astype(w_ref.dtype)
        b = b_ref[...]
        # TODO(synk): strided depthwise could also use the VPU FMA path instead of
        #             `groups` tiny MXU matmuls.
        for g in range(groups):
            xg = x_ref[0, g * cik:(g + 1) * cik, :]            # ref slice, per-group load
            wg = ws[g * co_g:(g + 1) * co_g, :]
            acc = jnp.dot(wg, xg, preferred_element_type=jnp.float32)
            o_ref[0, g * co_g:(g + 1) * co_g, :] = (
                acc + b[g * co_g:(g + 1) * co_g, :]).astype(o_ref.dtype)

    return kernel


# ---------------------------------------------------------------------------
# Wrapper: conv1d(x, weight * inv_sigma, bias) with inv_sigma fused in the kernel.
# ---------------------------------------------------------------------------
def conv1d_sn_pallas(x, weight, bias, inv_sigma, *, stride=1, padding=0, groups=1,
                     use_bf16=False):
    n, c_in, l = x.shape
    c_out, c_in_g, k_size = weight.shape
    l_out = (l + 2 * padding - k_size) // stride + 1
    out_dtype = x.dtype
    cdt = jnp.bfloat16 if use_bf16 else x.dtype            # numerics-sensitive option

    budget = _vmem_limit_bytes()
    cparams = pltpu.CompilerParams(
        dimension_semantics=("parallel", "parallel"), vmem_limit_bytes=budget)

    b_arr = bias if bias is not None else jnp.zeros((c_out,), jnp.float32)
    b2 = b_arr.reshape(c_out, 1).astype(jnp.float32)

    # NOTE: for tiny c_out / short L one could additionally fold the batch into the
    # lane axis to cut grid steps by x n; not done here to keep the halo logic simple.

    if stride == 1 and k_size - 1 <= 128:
        # --- direct path: no im2col in HBM, x read once (+ tiny halo re-read) ------
        tl = _pick_tl(c_in, c_out, l_out, budget)
        n_t = _cdiv(l_out, tl)
        l_tiles = n_t * tl
        # single pad: conv left-padding + enough tail for tiles and the 128-col halo
        right = l_tiles + 128 - padding - l
        x_work = jnp.pad(x, ((0, 0), (0, 0), (padding, right))).astype(cdt)
        # weight layout (c_out, K*c_in_g): column = kk*c_in_g + ci
        w2 = weight.transpose(0, 2, 1).reshape(c_out, k_size * c_in_g).astype(cdt)

        depthwise = (groups == c_in) and (c_out == c_in) and (c_in_g == 1)
        kernel = _make_direct_conv_kernel(c_out, c_in_g, k_size, groups, tl, depthwise)
        halo_step = tl // 128

        y = pl.pallas_call(
            kernel,
            out_shape=jax.ShapeDtypeStruct((n, c_out, l_tiles), out_dtype),
            grid=(n, n_t),
            in_specs=[
                pl.BlockSpec(memory_space=pltpu.MemorySpace.SMEM),            # 1/sigma
                _x_block_spec((1, c_in, tl), lambda b, t: (b, 0, t), n * n_t),
                pl.BlockSpec((1, c_in, 128),
                             lambda b, t: (b, 0, (t + 1) * halo_step)),        # halo
                pl.BlockSpec((c_out, k_size * c_in_g), lambda b, t: (0, 0)),   # weight
                pl.BlockSpec((c_out, 1), lambda b, t: (0, 0)),                 # bias
            ],
            out_specs=pl.BlockSpec((1, c_out, tl), lambda b, t: (b, 0, t)),
            compiler_params=cparams,
        )(inv_sigma, x_work, x_work, w2, b2)
        return y[:, :, :l_out]

    # --- strided fallback: im2col in the wrapper, but only ONE pad (no re-pad) -----
    tl = _pick_tl(c_in * k_size, c_out, l_out, budget)
    n_t = _cdiv(l_out, tl)
    l_out_pad = n_t * tl
    needed = (l_out_pad - 1) * stride + k_size
    right = max(0, needed - padding - l)
    x_pad = jnp.pad(x, ((0, 0), (0, 0), (padding, right)))
    taps = [jax.lax.slice_in_dim(x_pad, kk, kk + (l_out_pad - 1) * stride + 1,
                                 stride=stride, axis=2)
            for kk in range(k_size)]
    x_unf = jnp.stack(taps, axis=2).reshape(n, c_in * k_size, l_out_pad).astype(cdt)
    w2 = weight.reshape(c_out, c_in_g * k_size).astype(cdt)

    kernel = _make_im2col_kernel(c_out, c_in_g, k_size, groups)
    y = pl.pallas_call(
        kernel,
        out_shape=jax.ShapeDtypeStruct((n, c_out, l_out_pad), out_dtype),
        grid=(n, n_t),
        in_specs=[
            pl.BlockSpec(memory_space=pltpu.MemorySpace.SMEM),                 # 1/sigma
            _x_block_spec((1, c_in * k_size, tl), lambda b, t: (b, 0, t), n * n_t),
            pl.BlockSpec((c_out, c_in_g * k_size), lambda b, t: (0, 0)),       # weight
            pl.BlockSpec((c_out, 1), lambda b, t: (0, 0)),                     # bias
        ],
        out_specs=pl.BlockSpec((1, c_out, tl), lambda b, t: (b, 0, t)),
        compiler_params=cparams,
    )(inv_sigma, x_unf, w2, b2)
    return y[:, :, :l_out]


# ---------------------------------------------------------------------------
# Module-equivalent forward
# ---------------------------------------------------------------------------
@functools.partial(jax.jit, static_argnames=("stride", "padding", "groups", "use_bf16"))
def spectral_norm_conv1d_forward(x, weight, bias, u, *, stride=1, padding=0, groups=1,
                                 use_bf16=False):
    out_ch = weight.shape[0]
    w_mat = weight.reshape(out_ch, -1).astype(jnp.float32)
    inv_sigma, u_new = spectral_sigma(w_mat, u.astype(jnp.float32))
    y = conv1d_sn_pallas(x, weight, bias, inv_sigma, stride=stride, padding=padding,
                         groups=groups, use_bf16=use_bf16)
    return y, u_new


# ---------------------------------------------------------------------------
if __name__ == "__main__":
    def run_case(name, batch, length, in_ch, out_ch, k_size, stride, padding, groups, key):
        kx, kw, kb, ku = jax.random.split(key, 4)
        x = jax.random.normal(kx, (batch, in_ch, length), jnp.float32)
        weight = jax.random.normal(kw, (out_ch, in_ch // groups, k_size),
                                   jnp.float32) * 0.1
        bias = jax.random.normal(kb, (out_ch,), jnp.float32) * 0.1
        # spectral_norm's `u` buffer: normal(0,1) then l2-normalized
        u0 = jax.random.normal(ku, (out_ch,), jnp.float32)
        u0 = u0 / jnp.maximum(jnp.linalg.norm(u0), 1e-12)

        y, u_new = spectral_norm_conv1d_forward(
            x, weight, bias, u0, stride=stride, padding=padding, groups=groups)
        y = jax.block_until_ready(y)

        # Pure-JAX reference (same math, XLA conv).
        w_mat = weight.reshape(out_ch, -1)
        v = w_mat.T @ u0
        v = v / jnp.maximum(jnp.linalg.norm(v), 1e-12)
        wu = w_mat @ v
        u_ref = wu / jnp.maximum(jnp.linalg.norm(wu), 1e-12)
        sigma_ref = u_ref @ (w_mat @ v)
        y_ref = jax.lax.conv_general_dilated(
            x, weight / sigma_ref, window_strides=(stride,),
            padding=[(padding, padding)],
            dimension_numbers=("NCH", "OIH", "NCH"),
            feature_group_count=groups) + bias[None, :, None]

        l_out = (length + 2 * padding - k_size) // stride + 1
        assert y.shape == (batch, out_ch, l_out), (name, y.shape)
        err_y = float(jnp.max(jnp.abs(y - y_ref)))
        err_u = float(jnp.max(jnp.abs(u_new - u_ref)))
        assert jnp.allclose(y, y_ref, atol=1e-5, rtol=1e-5), (name, err_y)
        assert jnp.allclose(u_new, u_ref, atol=1e-5, rtol=1e-5), (name, err_u)

    key = jax.random.PRNGKey(0)
    k1, k2, k3 = jax.random.split(key, 3)
    # SpectralNormConv1d(4, 8, 3, stride=1, padding=1)  -> direct path, MXU matmuls
    run_case("standard", 2, 16, 4, 8, 3, 1, 1, 1, k1)
    # SpectralNormConv1d(8, 8, 3, padding=1, groups=8)  -> direct path, VPU depthwise
    run_case("depthwise", 2, 16, 8, 8, 3, 1, 1, 8, k2)
    # SpectralNormConv1d(4, 8, 3, stride=2, padding=1)  -> im2col fallback path
    run_case("strided", 2, 16, 4, 8, 3, 2, 1, 1, k3)

    print("KERNEL_OK")
</pallas_src>

<mosaic_0001>
module attributes {stable_mosaic.version = 11 : i64} {
  func.func @_sigma_kernel(%arg0: i32, %arg1: memref<8x12xf32, #tpu.memory_space<vmem>>, %arg2: memref<1x8xf32, #tpu.memory_space<vmem>>, %arg3: memref<1x1xf32, #tpu.memory_space<vmem>>, %arg4: memref<1x8xf32, #tpu.memory_space<vmem>>, %arg5: memref<1x8xf32, #tpu.memory_space<vmem>>, %arg6: memref<1x1xf32, #tpu.memory_space<vmem>>) attributes {dimension_semantics = [#tpu.dimension_semantics<arbitrary>], iteration_bounds = array<i64: 1>, scalar_prefetch = 0 : i64, scratch_operands = 2 : i64, tpu.core_type = #tpu.core_type<tc>, window_params = [{transform_indices = @transform_0, window_bounds = array<i64: 8, 12>}, {pipeline_mode = #tpu.pipeline_mode<synchronous>, transform_indices = @transform_1, window_bounds = array<i64: 1, 8>}, {pipeline_mode = #tpu.pipeline_mode<synchronous>, transform_indices = @transform_2, window_bounds = array<i64: 1, 1>}, {pipeline_mode = #tpu.pipeline_mode<synchronous>, transform_indices = @transform_3, window_bounds = array<i64: 1, 8>}]} {
    %c0_i32 = arith.constant 0 : i32
    %0 = arith.cmpi eq, %arg0, %c0_i32 : i32
    %1 = arith.extui %0 : i1 to i32
    %c0_i32_0 = arith.constant 0 : i32
    %2 = arith.cmpi ne, %1, %c0_i32_0 : i32
    scf.if %2 {
      %cst_16 = arith.constant 0.000000e+00 : f32
      %22 = vector.broadcast %cst_16 : f32 to vector<1x8xf32>
      %c0_17 = arith.constant 0 : index
      %c0_18 = arith.constant 0 : index
      %23 = vector.load %arg5[%c0_17, %c0_18] : memref<1x8xf32, #tpu.memory_space<vmem>>, vector<1x8xf32>
      tpu.vector_store %arg5[%c0_17, %c0_18], %22 {strides = array<i32>} : memref<1x8xf32, #tpu.memory_space<vmem>>, vector<1x8xf32>,
      %cst_19 = arith.constant 0.000000e+00 : f32
      %24 = vector.broadcast %cst_19 : f32 to vector<1x1xf32>
      %c0_20 = arith.constant 0 : index
      %c0_21 = arith.constant 0 : index
      %25 = vector.load %arg6[%c0_20, %c0_21] : memref<1x1xf32, #tpu.memory_space<vmem>>, vector<1x1xf32>
      tpu.vector_store %arg6[%c0_20, %c0_21], %24 {strides = array<i32>} : memref<1x1xf32, #tpu.memory_space<vmem>>, vector<1x1xf32>,
    } else {
    }
    %c0 = arith.constant 0 : index
    %c0_1 = arith.constant 0 : index
    %3 = vector.load %arg1[%c0, %c0_1] : memref<8x12xf32, #tpu.memory_space<vmem>>, vector<8x12xf32>
    %c0_2 = arith.constant 0 : index
    %c0_3 = arith.constant 0 : index
    %4 = vector.load %arg2[%c0_2, %c0_3] : memref<1x8xf32, #tpu.memory_space<vmem>>, vector<1x8xf32>
    %cst = arith.constant dense<0.000000e+00> : vector<1x12xf32>
    %5 = tpu.matmul %4, %3, %cst {dimension_numbers = #tpu.dot_dimension_numbers<[1], [0], [0], [1], [0, 0, 1, 1], [], []>} : vector<1x8xf32>, vector<8x12xf32>, vector<1x12xf32> -> vector<1x12xf32>
    %c0_4 = arith.constant 0 : index
    %c0_5 = arith.constant 0 : index
    %6 = vector.load %arg6[%c0_4, %c0_5] : memref<1x1xf32, #tpu.memory_space<vmem>>, vector<1x1xf32>
    %7 = arith.mulf %5, %5 : vector<1x12xf32>
    %8 = vector.shape_cast %7 : vector<1x12xf32> to vector<1x1x12xf32>
    %cst_6 = arith.constant dense<0.000000e+00> : vector<1xf32>
    %9 = vector.multi_reduction <add>, %8, %cst_6 [1, 2] : vector<1x1x12xf32> to vector<1xf32>
    %10 = vector.shape_cast %9 : vector<1xf32> to vector<1x1x1xf32>
    %11 = vector.extract %10[0, 0, 0] : f32 from vector<1x1x1xf32>
    %12 = vector.broadcast %11 : f32 to vector<1x1xf32>
    %13 = arith.addf %6, %12 : vector<1x1xf32>
    %c0_7 = arith.constant 0 : index
    %c0_8 = arith.constant 0 : index
    %14 = vector.load %arg6[%c0_7, %c0_8] : memref<1x1xf32, #tpu.memory_space<vmem>>, vector<1x1xf32>
    tpu.vector_store %arg6[%c0_7, %c0_8], %13 {strides = array<i32>} : memref<1x1xf32, #tpu.memory_space<vmem>>, vector<1x1xf32>,
    %c0_9 = arith.constant 0 : index
    %c0_10 = arith.constant 0 : index
    %15 = vector.load %arg5[%c0_9, %c0_10] : memref<1x8xf32, #tpu.memory_space<vmem>>, vector<1x8xf32>
    %cst_11 = arith.constant dense<0.000000e+00> : vector<1x8xf32>
    %16 = tpu.matmul %5, %3, %cst_11 {dimension_numbers = #tpu.dot_dimension_numbers<[1], [1], [0], [0], [0, 0, 1, 0], [], []>} : vector<1x12xf32>, vector<8x12xf32>, vector<1x8xf32> -> vector<1x8xf32>
    %17 = arith.addf %15, %16 : vector<1x8xf32>
    %c0_12 = arith.constant 0 : index
    %c0_13 = arith.constant 0 : index
    %18 = vector.load %arg5[%c0_12, %c0_13] : memref<1x8xf32, #tpu.memory_space<vmem>>, vector<1x8xf32>
    tpu.vector_store %arg5[%c0_12, %c0_13], %17 {strides = array<i32>} : memref<1x8xf32, #tpu.memory_space<vmem>>, vector<1x8xf32>,
    %c0_i32_14 = arith.constant 0 : i32
    %19 = arith.cmpi eq, %arg0, %c0_i32_14 : i32
    %20 = arith.extui %19 : i1 to i32
    %c0_i32_15 = arith.constant 0 : i32
    %21 = arith.cmpi ne, %20, %c0_i32_15 : i32
    scf.if %21 {
      %c0_16 = arith.constant 0 : index
      %c0_17 = arith.constant 0 : index
      %22 = vector.load %arg6[%c0_16, %c0_17] : memref<1x1xf32, #tpu.memory_space<vmem>>, vector<1x1xf32>
      %cst_18 = arith.constant 1.000000e-24 : f32
      %23 = vector.broadcast %cst_18 : f32 to vector<1x1xf32>
      %24 = arith.maximumf %22, %23 : vector<1x1xf32>
      %25 = math.rsqrt %24 : vector<1x1xf32>
      %c0_19 = arith.constant 0 : index
      %c0_20 = arith.constant 0 : index
      %26 = vector.load %arg5[%c0_19, %c0_20] : memref<1x8xf32, #tpu.memory_space<vmem>>, vector<1x8xf32>
      %27 = vector.broadcast %25 : vector<1x1xf32> to vector<1x8xf32>
      %28 = arith.mulf %26, %27 : vector<1x8xf32>
      %29 = arith.mulf %28, %28 : vector<1x8xf32>
      %30 = vector.shape_cast %29 : vector<1x8xf32> to vector<1x1x8xf32>
      %cst_21 = arith.constant dense<0.000000e+00> : vector<1xf32>
      %31 = vector.multi_reduction <add>, %30, %cst_21 [1, 2] : vector<1x1x8xf32> to vector<1xf32>
      %32 = vector.shape_cast %31 : vector<1xf32> to vector<1x1x1xf32>
      %33 = vector.extract %32[0, 0, 0] : f32 from vector<1x1x1xf32>
      %34 = vector.broadcast %33 : f32 to vector<1x1xf32>
      %cst_22 = arith.constant 1.000000e-24 : f32
      %35 = vector.broadcast %cst_22 : f32 to vector<1x1xf32>
      %36 = arith.maximumf %34, %35 : vector<1x1xf32>
      %37 = math.rsqrt %36 : vector<1x1xf32>
      %38 = vector.broadcast %37 : vector<1x1xf32> to vector<1x8xf32>
      %39 = arith.mulf %28, %38 : vector<1x8xf32>
      %40 = arith.mulf %39, %28 : vector<1x8xf32>
      %41 = vector.shape_cast %40 : vector<1x8xf32> to vector<1x1x8xf32>
      %cst_23 = arith.constant dense<0.000000e+00> : vector<1xf32>
      %42 = vector.multi_reduction <add>, %41, %cst_23 [1, 2] : vector<1x1x8xf32> to vector<1xf32>
      %43 = vector.shape_cast %42 : vector<1xf32> to vector<1x1x1xf32>
      %44 = vector.extract %43[0, 0, 0] : f32 from vector<1x1x1xf32>
      %45 = vector.broadcast %44 : f32 to vector<1x1xf32>
      %cst_24 = arith.constant 1.000000e+00 : f32
      %46 = vector.broadcast %cst_24 : f32 to vector<1x1xf32>
      %47 = arith.divf %46, %45 : vector<1x1xf32>
      %c0_25 = arith.constant 0 : index
      %c0_26 = arith.constant 0 : index
      %48 = vector.load %arg3[%c0_25, %c0_26] : memref<1x1xf32, #tpu.memory_space<vmem>>, vector<1x1xf32>
      tpu.vector_store %arg3[%c0_25, %c0_26], %47 {strides = array<i32>} : memref<1x1xf32, #tpu.memory_space<vmem>>, vector<1x1xf32>,
      %c0_27 = arith.constant 0 : index
      %c0_28 = arith.constant 0 : index
      %49 = vector.load %arg4[%c0_27, %c0_28] : memref<1x8xf32, #tpu.memory_space<vmem>>, vector<1x8xf32>
      tpu.vector_store %arg4[%c0_27, %c0_28], %39 {strides = array<i32>} : memref<1x8xf32, #tpu.memory_space<vmem>>, vector<1x8xf32>,
    } else {
    }
    return
  }
  func.func @transform_0(%arg0: i32) -> (i32, i32) {
    %c0_i32 = arith.constant 0 : i32
    %c0_i32_0 = arith.constant 0 : i32
    return %c0_i32, %arg0 : i32, i32
  }
  func.func @transform_1(%arg0: i32) -> (i32, i32) {
    %c0_i32 = arith.constant 0 : i32
    %c0_i32_0 = arith.constant 0 : i32
    %c0_i32_1 = arith.constant 0 : i32
    return %c0_i32, %c0_i32_0 : i32, i32
  }
  func.func @transform_2(%arg0: i32) -> (i32, i32) {
    %c0_i32 = arith.constant 0 : i32
    %c0_i32_0 = arith.constant 0 : i32
    %c0_i32_1 = arith.constant 0 : i32
    return %c0_i32, %c0_i32_0 : i32, i32
  }
  func.func @transform_3(%arg0: i32) -> (i32, i32) {
    %c0_i32 = arith.constant 0 : i32
    %c0_i32_0 = arith.constant 0 : i32
    %c0_i32_1 = arith.constant 0 : i32
    return %c0_i32, %c0_i32_0 : i32, i32
  }
}

module attributes {stable_mosaic.version = 11 : i64} {
  func.func @kernel(%arg0: i32, %arg1: i32, %arg2: memref<1x1xf32, #tpu.memory_space<smem>>, %arg3: memref<1x4x128xf32, #tpu.memory_space<vmem>>, %arg4: memref<1x4x128xf32, #tpu.memory_space<vmem>>, %arg5: memref<8x12xf32, #tpu.memory_space<vmem>>, %arg6: memref<8x1xf32, #tpu.memory_space<vmem>>, %arg7: memref<1x8x128xf32, #tpu.memory_space<vmem>>) attributes {dimension_semantics = [#tpu.dimension_semantics<parallel>, #tpu.dimension_semantics<parallel>], iteration_bounds = array<i64: 2, 1>, scalar_prefetch = 0 : i64, scratch_operands = 0 : i64, tpu.core_type = #tpu.core_type<tc>, window_params = [{transform_indices = @transform_0, window_bounds = array<i64: 1, 1>}, {transform_indices = @transform_1, window_bounds = array<i64: 1, 4, 128>}, {transform_indices = @transform_2, window_bounds = array<i64: 1, 4, 128>}, {pipeline_mode = #tpu.pipeline_mode<synchronous>, transform_indices = @transform_3, window_bounds = array<i64: 8, 12>}, {pipeline_mode = #tpu.pipeline_mode<synchronous>, transform_indices = @transform_4, window_bounds = array<i64: 8, 1>}, {transform_indices = @transform_5, window_bounds = array<i64: 1, 8, 128>}]} {
    %c0 = arith.constant 0 : index
    %c0_0 = arith.constant 0 : index
    %0 = memref.load %arg2[%c0, %c0_0] : memref<1x1xf32, #tpu.memory_space<smem>>
    %c0_1 = arith.constant 0 : index
    %c0_2 = arith.constant 0 : index
    %1 = vector.load %arg5[%c0_1, %c0_2] : memref<8x12xf32, #tpu.memory_space<vmem>>, vector<8x12xf32>
    %2 = vector.broadcast %0 : f32 to vector<8x12xf32>
    %3 = arith.mulf %1, %2 : vector<8x12xf32>
    %c0_3 = arith.constant 0 : index
    %c0_4 = arith.constant 0 : index
    %4 = vector.load %arg6[%c0_3, %c0_4] : memref<8x1xf32, #tpu.memory_space<vmem>>, vector<8x1xf32>
    %c0_5 = arith.constant 0 : index
    %c0_6 = arith.constant 0 : index
    %c0_7 = arith.constant 0 : index
    %5 = vector.load %arg3[%c0_5, %c0_6, %c0_7] : memref<1x4x128xf32, #tpu.memory_space<vmem>>, vector<1x4x128xf32>
    %6 = vector.shape_cast %5 : vector<1x4x128xf32> to vector<4x128xf32>
    %c0_8 = arith.constant 0 : index
    %c0_9 = arith.constant 0 : index
    %c0_10 = arith.constant 0 : index
    %7 = vector.load %arg4[%c0_8, %c0_9, %c0_10] : memref<1x4x128xf32, #tpu.memory_space<vmem>>, vector<1x4x128xf32>
    %8 = vector.shape_cast %7 : vector<1x4x128xf32> to vector<4x128xf32>
    %9 = tpu.concatenate %6, %8 in 1 : vector<4x128xf32>, vector<4x128xf32> -> vector<4x256xf32>
    %cst = arith.constant 0.000000e+00 : f32
    %10 = vector.broadcast %cst : f32 to vector<8x128xf32>
    %11 = vector.extract_strided_slice %3 {offsets = [0, 0], sizes = [8, 4], strides = [1, 1]} : vector<8x12xf32> to vector<8x4xf32>
    %12 = vector.extract_strided_slice %9 {offsets = [0, 0], sizes = [4, 128], strides = [1, 1]} : vector<4x256xf32> to vector<4x128xf32>
    %cst_11 = arith.constant dense<0.000000e+00> : vector<8x128xf32>
    %13 = tpu.matmul %11, %12, %cst_11 {dimension_numbers = #tpu.dot_dimension_numbers<[1], [0], [0], [1], [0, 0, 1, 1], [], []>} : vector<8x4xf32>, vector<4x128xf32>, vector<8x128xf32> -> vector<8x128xf32>
    %14 = arith.addf %10, %13 : vector<8x128xf32>
    %15 = vector.extract_strided_slice %3 {offsets = [0, 4], sizes = [8, 4], strides = [1, 1]} : vector<8x12xf32> to vector<8x4xf32>
    %16 = vector.extract_strided_slice %9 {offsets = [0, 1], sizes = [4, 128], strides = [1, 1]} : vector<4x256xf32> to vector<4x128xf32>
    %cst_12 = arith.constant dense<0.000000e+00> : vector<8x128xf32>
    %17 = tpu.matmul %15, %16, %cst_12 {dimension_numbers = #tpu.dot_dimension_numbers<[1], [0], [0], [1], [0, 0, 1, 1], [], []>} : vector<8x4xf32>, vector<4x128xf32>, vector<8x128xf32> -> vector<8x128xf32>
    %18 = arith.addf %14, %17 : vector<8x128xf32>
    %19 = vector.extract_strided_slice %3 {offsets = [0, 8], sizes = [8, 4], strides = [1, 1]} : vector<8x12xf32> to vector<8x4xf32>
    %20 = vector.extract_strided_slice %9 {offsets = [0, 2], sizes = [4, 128], strides = [1, 1]} : vector<4x256xf32> to vector<4x128xf32>
    %cst_13 = arith.constant dense<0.000000e+00> : vector<8x128xf32>
    %21 = tpu.matmul %19, %20, %cst_13 {dimension_numbers = #tpu.dot_dimension_numbers<[1], [0], [0], [1], [0, 0, 1, 1], [], []>} : vector<8x4xf32>, vector<4x128xf32>, vector<8x128xf32> -> vector<8x128xf32>
    %22 = arith.addf %18, %21 : vector<8x128xf32>
    %23 = vector.broadcast %4 : vector<8x1xf32> to vector<8x128xf32>
    %24 = arith.addf %22, %23 : vector<8x128xf32>
    %c0_14 = arith.constant 0 : index
    %c0_15 = arith.constant 0 : index
    %c0_16 = arith.constant 0 : index
    %25 = vector.load %arg7[%c0_14, %c0_15, %c0_16] : memref<1x8x128xf32, #tpu.memory_space<vmem>>, vector<1x8x128xf32>
    %26 = vector.shape_cast %25 : vector<1x8x128xf32> to vector<8x128xf32>
    %27 = vector.shape_cast %24 : vector<8x128xf32> to vector<1x8x128xf32>
    tpu.vector_store %arg7[%c0_14, %c0_15, %c0_16], %27 {strides = array<i32>} : memref<1x8x128xf32, #tpu.memory_space<vmem>>, vector<1x8x128xf32>,
    return
  }
  func.func @transform_0(%arg0: i32, %arg1: i32) -> (i32, i32) {
    %c0_i32 = arith.constant 0 : i32
    %c0_i32_0 = arith.constant 0 : i32
    %c0_i32_1 = arith.constant 0 : i32
    return %c0_i32, %c0_i32_0 : i32, i32
  }
  func.func @transform_1(%arg0: i32, %arg1: i32) -> (i32, i32, i32) {
    %c0_i32 = arith.constant 0 : i32
    %c0_i32_0 = arith.constant 0 : i32
    return %arg0, %c0_i32, %arg1 : i32, i32, i32
  }
  func.func @transform_2(%arg0: i32, %arg1: i32) -> (i32, i32, i32) {
    %c1_i32 = arith.constant 1 : i32
    %0 = arith.addi %arg1, %c1_i32 : i32
    %c1_i32_0 = arith.constant 1 : i32
    %1 = arith.muli %0, %c1_i32_0 : i32
    %c0_i32 = arith.constant 0 : i32
    %c0_i32_1 = arith.constant 0 : i32
    return %arg0, %c0_i32, %1 : i32, i32, i32
  }
  func.func @transform_3(%arg0: i32, %arg1: i32) -> (i32, i32) {
    %c0_i32 = arith.constant 0 : i32
    %c0_i32_0 = arith.constant 0 : i32
    %c0_i32_1 = arith.constant 0 : i32
    return %c0_i32, %c0_i32_0 : i32, i32
  }
  func.func @transform_4(%arg0: i32, %arg1: i32) -> (i32, i32) {
    %c0_i32 = arith.constant 0 : i32
    %c0_i32_0 = arith.constant 0 : i32
    %c0_i32_1 = arith.constant 0 : i32
    return %c0_i32, %c0_i32_0 : i32, i32
  }
  func.func @transform_5(%arg0: i32, %arg1: i32) -> (i32, i32, i32) {
    %c0_i32 = arith.constant 0 : i32
    %c0_i32_0 = arith.constant 0 : i32
    return %arg0, %c0_i32, %arg1 : i32, i32, i32
  }
}

</mosaic_0001>

<bundles_post_ra>
// kernel: spectral_norm_conv1d_forward.3
= control target key start
LH: loop header
LB: loop body
LE: loop exit
PB: predicated region body
PF: predicated region fallthrough
CT: control target
= control target key end

     0   :  { %s1423_s0 = inlined_call_operand.<no memory space> [shape: f32[1,1], index: 0, kind: input, shape index: {}]   ;;  %s1424_s1 = inlined_call_operand.hbm [shape: f32[2,4,256], index: 1, kind: input, shape index: {}, may-alias: {1,2}]   ;;  %s1425_s2 = inlined_call_operand.hbm [shape: f32[2,4,256], index: 2, kind: input, shape index: {}, may-alias: {1,2}]   ;;  %s1426_s3 = inlined_call_operand.hbm [shape: f32[8,12], index: 3, kind: input, shape index: {}]   ;;  %s1427_s4 = inlined_call_operand.hbm [shape: f32[8,1], index: 4, kind: input, shape index: {}]   ;;  %s1428_s5 = inlined_call_operand.hbm [shape: f32[2,8,128], index: 5, kind: output, shape index: {}]  }
   0x1   :  { %1434 = sst [smem:[#allocation18_spill]] %s1426_s3 }
   0x2   :  { %1435 = sst [smem:[#allocation19_spill]] %s1427_s4 }
   0x3   :  { %10 = sst [smem:[#allocation2]] %s1423_s0 }
   0x4   :  { %11 = vsyncpa [#allocation4], 0 }
   0x5   :  { %13 = vsyncpa [#allocation4 + $0x1], 0 }
   0x6   :  { %14 = vsyncpa [#allocation7], 0 }
   0x7   :  { %16 = vsyncpa [#allocation7 + $0x1], 0 }
   0x8   :  { %17 = vsyncpa [#allocation10], 0 }
   0x9   :  { %18 = vsyncpa [#allocation5], 0 }
   0xa   :  { %20 = vsyncpa [#allocation5 + $0x1], 0  ;;  %s1133_s20 = smov 0   ;;  %s1135_s21 = smov 0  }
   0xb   :  { %s1137_s22 = smov 0   ;;  %s1139_s23 = smov 0  }
   0xc   :  { %s1141_s24 = smov 0   ;;  %s1143_s25 = smov 0  }
   0xd LB: > { %s1164_s0 = sadd.s32 4294967295, %s1086_s25   ;;  %s729_s26 = sadd.s32 4294967294, %s1086_s25   ;;  %s1086_s25 = sphi %s1143_s25, %s26_s25   ;;  %s1082_s24 = sphi %s1141_s24, %s1460_s24   ;;  %s1078_s23 = sphi %s1139_s23, %s1459_s23   ;;  %s1074_s22 = sphi %s1137_s22, %s1458_s22   ;;  %s1070_s21 = sphi %s1135_s21, %s1457_s21   ;;  %s1066_s20 = sphi %s1133_s20, %s1456_s20  }
   0xe   : > { %p81_p0 = scmp.ne.s32.totalorder %s1070_s21, %s1066_s20  ;;  %p1429_p1 = scmp.eq.s32.totalorder %s1164_s0, 0 }
   0xf   : > { %p185_p3 = scmp.eq.s32.totalorder %s729_s26, 1  ;;  %p730_p5 = scmp.ge.s32.totalorder %s1086_s25, 1 }
  0x10   : > { %p1173_p4 = por %p1429_p1, %p81_p0  ;;  %p192_p7 = scmp.lt.s32.totalorder %s1086_s25, 3 }
  0x11   : > { %p1178_p6 = por %p185_p3, %p81_p0  ;;  %s1088_s30 = smov [#allocation8]  }
  0x12   : > { %s1436_s27 = scalar_select %p1173_p4, 1, 0 }
  0x13   : > { %s1437_s28 = scalar_select %p1178_p6, 1, 0 }
  0x14   : > { %p1183_p8 = pnand %p730_p5, %p192_p7  ;;  %s208_s6 = sshll.u32 %s1088_s30, 4  ;;  %s209_s6 = int_to_ptr.vmem [resolvable:$true] %s208_s6 }
  0x15   : > { %s1089_s7 = smov [#allocation9]   ;;  %s1440_s3 = sld [smem:[#allocation18_spill]] }
  0x16   : > { %s1438_s29 = scalar_select %p1183_p8, 1, 0 }
  0x17   : > { %p793_p10 = pneg %p1183_p8  ;;  %s219_s8 = sshll.u32 %s1089_s7, 4  ;;  %s1196_s8 = int_to_ptr.vmem [resolvable:$true] %s219_s8 }
  0x19   : > { %p1192_p11 = pnand %p793_p10, %p1429_p1 }
  0x1b   : > { %s875_s12 = scalar_lea.hbm %s1440_s3, 128  ;;  %p877_p13 = pneg %p1192_p11 }
  0x1c   : > { %p876_p12 = scmp.ne.s32.totalorder %s1440_s3, %s875_s12  ;;  %p882_p5 = scmp.lt.u32.totalorder %s875_s12, %s1440_s3 }
  0x1e   : > { %p878_p0 = pnand %p877_p13, %p876_p12 }
  0x20   : > { %p879_p3 = pneg %p878_p0 }
  0x22   : > { %p884_p7 = pnand %p882_p5, %p879_p3 }
  0x24   : > { %887 = shalt.err (!%p884_p7)
}
  0x25   : > { %s888_s17 = scalar_lea.vmem %s209_s6, 128  ;;  %p896_p2 = scmp.lt.s32.totalorder %s209_s6, %s209_s6 }
  0x26   : > { %p889_p10 = scmp.ne.s32.totalorder %s209_s6, %s888_s17  ;;  %p897_p6 = scmp.lt.s32.totalorder %s888_s17, %s888_s17 }
  0x28   : > { %p891_p9 = pnand %p889_p10, %p877_p13  ;;  %p898_p4 = por %p897_p6, %p896_p2 }
  0x2a   : > { %p892_p1 = pneg %p891_p9 }
  0x2c   : > { %p899_p8 = pnand %p898_p4, %p892_p1 }
  0x2e   : > { %902 = shalt.err (!%p899_p8)
}
  0x2f   : > { %796 = dma.hbm_to_vmem [thread:$0]  (!%p1192_p11), %s1440_s3, 128, %s209_s6, [#allocation7]  }
  0x30   : > { %s1441_s4 = sld [smem:[#allocation19_spill]] }
  0x36   : > { %s903_s7 = scalar_lea.hbm %s1441_s4, 128 }
  0x37   : > { %p904_p9 = scmp.ne.s32.totalorder %s1441_s4, %s903_s7  ;;  %p910_p4 = scmp.lt.u32.totalorder %s903_s7, %s1441_s4 }
  0x39   : > { %p906_p2 = pnand %p904_p9, %p877_p13 }
  0x3b   : > { %p907_p1 = pneg %p906_p2 }
  0x3d   : > { %p912_p6 = pnand %p910_p4, %p907_p1 }
  0x3f   : > { %915 = shalt.err (!%p912_p6)
}
  0x40   : > { %s916_s6 = scalar_lea.vmem %s1196_s8, 128  ;;  %p924_p3 = scmp.lt.s32.totalorder %s1196_s8, %s1196_s8 }
  0x41   : > { %p917_p8 = scmp.ne.s32.totalorder %s1196_s8, %s916_s6  ;;  %p925_p5 = scmp.lt.s32.totalorder %s916_s6, %s916_s6 }
  0x43   : > { %p919_p12 = pnand %p917_p8, %p877_p13  ;;  %p926_p7 = por %p925_p5, %p924_p3 }
  0x45   : > { %p920_p0 = pneg %p919_p12 }
  0x47   : > { %p927_p10 = pnand %p926_p7, %p920_p0 }
  0x49   : > { %930 = shalt.err (!%p927_p10)
}
  0x4a   : > { %799 = dma.hbm_to_vmem [thread:$0]  (!%p1192_p11), %s1441_s4, 128, %s1196_s8, [#allocation10]  }
  0x4b   : > { %s38_s16 = sadd.s32 1, %s1082_s24  ;;  %s68_s17 = sadd.s32 1, %s1074_s22 }
  0x4c   : > { %p40_p13 = scmp.ge.s32.totalorder %s38_s16, 2  ;;  %p75_p9 = scmp.ne.s32.totalorder %s1074_s22, %s1070_s21 }
  0x4d   : > { %p76_p2 = scmp.eq.s32.totalorder %s1086_s25, 0  ;;  %p813_p1 = scmp.lt.s32.totalorder %s1086_s25, 2 }
  0x4e   : > { %s1462_s16 = smov (%p40_p13, %s38_s16), 0  ;;  %p1443_p6 = scmp.eq.s32.totalorder %s1164_s0, 1 }
  0x4f   : > { %1442 = sst [smem:[#allocation17_spill]] %s1462_s16  ;;  %p77_p4 = por %p76_p2, %p75_p9 }
  0x50   : > { %p1255_p8 = por %p1443_p6, %p75_p9  ;;  %s63_s18 = ssub.s32 %s1082_s24, %s1462_s16 }
  0x51   : > { %s230_s19 = sand.u32 1, %s1074_s22   ;;  %p66_p12 = scmp.eq.s32.totalorder %s63_s18, 0 }
  0x52   : > { %s1444_s9 = scalar_select %p1255_p8, 1, 0 }
  0x53   : > { %s1262_s8 = sshll.u32 %s230_s19, 2  ;;  %s756_s26 = sshll.u32 %s1082_s24, 7 }
  0x54   : > { %s1266_s30 = scalar_select %p66_p12, %s1074_s22, %s68_s17  }
  0x55   : > { %s1271_s11 = scalar_lea.hbm %s1424_s1, %s756_s26  ;;  %s234_s12 = scalar_lea.vmem [#allocation3], %s1262_s8 }
  0x56   : > { %s243_s13 = sshll.u32 %s234_s12, 4  ;;  %p1276_p11 = pnand %p813_p1, %p77_p4  ;;  %s1280_s13 = int_to_ptr.vmem [resolvable:$true] %s243_s13 }
  0x57   : > { %s1285_s17 = scalar_lea.hbm %s1425_s2, %s756_s26  ;;  %s231_s18 = scalar_lea.sflag [#allocation4], %s230_s19 }
  0x58   : > { %s931_s7 = scalar_lea.hbm %s1271_s11, 64  ;;  %p933_p3 = pneg %p1276_p11 }
  0x59   : > { %p932_p0 = scmp.ne.s32.totalorder %s1271_s11, %s931_s7  ;;  %s936_s3 = scalar_lea.hbm %s1424_s1, 256 }
  0x5a   : > { %p937_p10 = scmp.lt.u32.totalorder %s1271_s11, %s1424_s1  ;;  %p938_p13 = scmp.lt.u32.totalorder %s936_s3, %s931_s7 }
  0x5b   : > { %p934_p5 = pnand %p933_p3, %p932_p0  ;;  %p940_p2 = scmp.lt.u32.totalorder %s931_s7, %s1271_s11 }
  0x5c   : > { %p939_p9 = por %p938_p13, %p937_p10 }
  0x5d   : > { %p935_p7 = pneg %p934_p5 }
  0x5e   : > { %p941_p1 = por %p940_p2, %p939_p9 }
  0x60   : > { %p942_p4 = pnand %p941_p1, %p935_p7 }
  0x62   : > { %945 = shalt.err (!%p942_p4)
}
  0x63   : > { %s946_s19 = scalar_lea.vmem %s1280_s13, 64  ;;  %s1090_s26 = smov [#allocation3]  }
  0x64   : > { %p947_p6 = scmp.ne.s32.totalorder %s1280_s13, %s946_s19  ;;  %s951_s14 = sshll.u32 %s1090_s26, 4  ;;  %s952_s14 = int_to_ptr.vmem [resolvable:$false] %s951_s14 }
  0x65   : > { %s953_s4 = scalar_lea.vmem %s952_s14, 128  ;;  %p954_p5 = scmp.lt.s32.totalorder %s1280_s13, %s952_s14 }
  0x66   : > { %p949_p12 = pnand %p947_p6, %p933_p3  ;;  %p955_p10 = scmp.lt.s32.totalorder %s953_s4, %s946_s19 }
  0x68   : > { %p950_p0 = pneg %p949_p12  ;;  %p956_p13 = por %p955_p10, %p954_p5 }
  0x6a   : > { %p957_p9 = pnand %p956_p13, %p950_p0 }
  0x6c   : > { %960 = shalt.err (!%p957_p9)
}
  0x6d   : > { %803 = dma.hbm_to_vmem [thread:$0]  (!%p1276_p11), %s1271_s11, 64, %s1280_s13, %s231_s18  }
  0x6e   : > { %s250_s3 = sand.u32 1, %s1086_s25   ;;  %s1314_s16 = scalar_lea.hbm %s1285_s17, 64 }
  0x6f   : > { %s254_s15 = scalar_lea.vmem [#allocation6], %s1262_s8  ;;  %s251_s10 = scalar_lea.sflag [#allocation7], %s250_s3 }
  0x70   : > { %s264_s7 = sshll.u32 %s254_s15, 4  ;;  %s991_s12 = scalar_lea.hbm %s1285_s17, 128  ;;  %s265_s7 = int_to_ptr.vmem [resolvable:$true] %s264_s7 }
  0x71   : > { %p962_p7 = scmp.ne.s32.totalorder %s1314_s16, %s991_s12  ;;  %s966_s11 = scalar_lea.hbm %s1425_s2, 256 }
  0x72   : > { %p967_p4 = scmp.lt.u32.totalorder %s1314_s16, %s1425_s2  ;;  %p968_p6 = scmp.lt.u32.totalorder %s966_s11, %s991_s12 }
  0x73   : > { %p964_p2 = pnand %p962_p7, %p933_p3  ;;  %p970_p0 = scmp.lt.u32.totalorder %s991_s12, %s1314_s16 }
  0x74   : > { %p969_p12 = por %p968_p6, %p967_p4 }
  0x75   : > { %p965_p1 = pneg %p964_p2 }
  0x76   : > { %p971_p5 = por %p970_p0, %p969_p12 }
  0x78   : > { %p972_p10 = pnand %p971_p5, %p965_p1 }
  0x7a   : > { %975 = shalt.err (!%p972_p10)
}
  0x7b   : > { %s976_s8 = scalar_lea.vmem %s265_s7, 64  ;;  %s1091_s17 = smov [#allocation6]  }
  0x7c   : > { %p977_p13 = scmp.ne.s32.totalorder %s265_s7, %s976_s8  ;;  %s981_s14 = sshll.u32 %s1091_s17, 4  ;;  %s982_s14 = int_to_ptr.vmem [resolvable:$false] %s981_s14 }
  0x7d   : > { %s983_s4 = scalar_lea.vmem %s982_s14, 128  ;;  %p984_p2 = scmp.lt.s32.totalorder %s265_s7, %s982_s14 }
  0x7e   : > { %p979_p9 = pnand %p977_p13, %p933_p3  ;;  %p985_p8 = scmp.lt.s32.totalorder %s983_s4, %s976_s8 }
  0x80   : > { %p980_p7 = pneg %p979_p9  ;;  %p986_p4 = por %p985_p8, %p984_p2 }
  0x82   : > { %p987_p6 = pnand %p986_p4, %p980_p7 }
  0x84   : > { %990 = shalt.err (!%p987_p6)
}
  0x85   : > { %806 = dma.hbm_to_vmem [thread:$0]  (!%p1276_p11), %s1314_s16, 64, %s265_s7, %s251_s10  }
  0x86   : > { %p1446_p1 = scmp.ne.s32.totalorder %s1438_s29, 0 }
  0x87   : > { %s1339_s3 = sand.u32 (!%p1446_p1), 1, %s1070_s21   ;;  %p1447_p3 = scmp.ne.s32.totalorder (!%p1446_p1), %s1436_s27, 0 }
  0x88   : > { %273 = sbr.rel (%p1446_p1) target bundleno = 512 (0x200), region = 40  ;;  %s741_s15 = sshll.u32 (!%p1446_p1), %s1339_s3, 2 }
  0x89   : > { %s276_s12 = scalar_lea.sflag (!%p1446_p1), [#allocation4], %s1339_s3  ;;  %s279_s19 = scalar_lea.vmem (!%p1446_p1), [#allocation3], %s741_s15 }
  0x8f   : > { %1045 = dma.done.wait (%p1447_p3), %s276_s12, 64  }
  0x90   : > { %1047 = vsyncadd (%p1447_p3), %s276_s12, 4294967232  ;;  %s284_s6 = sand.u32 1, %s1164_s0   ;;  %s288_s29 = scalar_lea.vmem [#allocation6], %s741_s15 }
  0x91   : > { %s285_s16 = scalar_lea.sflag [#allocation7], %s284_s6 }
  0x92   : > { %1049 = dma.done.wait (%p1447_p3), %s285_s16, 64  }
  0x93   : > { %1051 = vsyncadd (%p1447_p3), %s285_s16, 4294967232  ;;  %p1448_p8 = scmp.eq.s32.totalorder %s1164_s0, 0 }
  0x95   : > { %1053 = dma.done.wait (%p1448_p8), [#allocation7], 128   ;;  %p1449_p11 = pmov %p1448_p8 }
  0x96   : > { %p1450_p12 = pmov %p1448_p8 }
  0x97   : > { %1055 = vsyncadd (%p1449_p11), [#allocation7], 4294967168 }
  0x98   : > { %1057 = dma.done.wait (%p1450_p12), [#allocation10], 128   ;;  %p1451_p0 = pmov %p1448_p8 }
  0x99   : > { %s329_s7 = sld [smem:[#allocation2]]  ;;  %v1092_v0 = vmov 0.0   ;;  %vm1093_vm0 = vmmov 0   ;;  %vm350_vm1 = vcmask 1043456   ;;  %v1094_v1 = vmov 0   ;;  %v330_v3 = vld [vmem:[#allocation8] sm:$0xff] }
  0x9a   : > { %1059 = vsyncadd (%p1451_p0), [#allocation10], 4294967168  ;;  %764 = vmatprep.subr.mxu0 %v1092_v0  ;;  %769 = vmatprep.subr.mxu1 %v1092_v0  ;;  %v334_v2 = vld [vmem:[%s279_s19] sm:$0xf]  ;;  %vm347_vm2 = vcmask 31744   ;;  %s1095_s27 = smov 127  }
  0x9b   : > { %766 = vmatprep.mubr.msk.f32.mxu0 %vm1093_vm0, %v1092_v0  ;;  %771 = vmatprep.mubr.msk.f32.mxu1 %vm1093_vm0, %v1092_v0  ;;  %s1096_s0 = smov 126   ;;  %v335_v6 = vld [vmem:[%s288_s29] sm:$0xf]  ;;  %s1097_s10 = smov 124   ;;  %v333_v7 = vld [vmem:[#allocation9] sm:$0xff]  ;;  %vm345_vm3 = vcmask 1039360  }
  0x9c   : > { %874 = vset.pattern.permute.xlu0 %v1094_v1  ;;  %499 = vrot.lane.b32.xlu1 %v334_v2, %s1096_s0  ;;  %s1098_s26 = smov 120   ;;  %vm503_vm4 = vcmask 1031168   ;;  %s745_s11 = sshll.u32 %s1339_s3, 3 }
  0x9d   : > { %341 = vrot.lane.b32.xlu0 %v334_v2, %s1095_s27  ;;  %770 = vmatpush3.msk.msra.mxu1 %vm350_vm1, %v334_v2  ;;  %s753_s13 = sshll.u32 %s1078_s23, 7  ;;  %s327_s18 = scalar_lea.vmem [#allocation11], %s745_s11 }
  0x9e   : > { %s602_s8 = sshll.u32 %s327_s18, 4  ;;  %s1374_s4 = scalar_lea.hbm %s1428_s5, %s753_s13  ;;  %s1376_s8 = int_to_ptr.vmem [resolvable:$true] %s602_s8 }
  0x9f   : > { %v331_v4 = vstv %s329_s7  ;;  %s588_s15 = scalar_lea.sflag [#allocation5], %s1339_s3  ;;  %s992_s12 = scalar_lea.vmem %s1376_s8, 128 }
  0xa0   : > { %v332_v5 = vmul.f32 %v331_v4, %v330_v3  ;;  %p993_p5 = scmp.ne.s32.totalorder %s1376_s8, %s992_s12  ;;  %p1452_p10 = scmp.ne.s32.totalorder %s1444_s9, 0 }
  0xa1   : > { %343 = vrot.lane.b32.xlu0 %v335_v6, %s1095_s27  ;;  %s1099_s23 = smov [#allocation11]  }
  0xa2   : > { %772 = vmatmul.mubr.msk.f32.vlgmr.msra.gmra.mrb[0].mxu1 %vm347_vm2, %v332_v5  ;;  %337 = vrot.lane.b32.xlu1 %v332_v5, %s1097_s10  ;;  %p994_p13 = pnand %p993_p5, %p1452_p10  ;;  %s996_s19 = sshll.u32 %s1099_s23, 4  ;;  %s997_s19 = int_to_ptr.vmem [resolvable:$false] %s996_s19 }
  0xa3   : > { %s998_s6 = scalar_lea.vmem %s997_s19, 256  ;;  %p999_p7 = scmp.lt.s32.totalorder %s1376_s8, %s997_s19 }
  0xa4   : > { %p995_p9 = pneg %p994_p13  ;;  %p1000_p2 = scmp.lt.s32.totalorder %s998_s6, %s992_s12 }
  0xa5   : > { %501 = vrot.lane.b32.xlu0 %v335_v6, %s1096_s0 }
  0xa6   : > { %497 = vrot.lane.b32.xlu1 %v332_v5, %s1098_s26  ;;  %p1001_p4 = por %p1000_p2, %p999_p7 }
  0xa8   : > { %p1002_p6 = pnand %p1001_p4, %p995_p9 }
  0xa9   : > { %582 = vperm.xlu0 %874, %v333_v7  }
 0x10e   : > { %v500_v9 = vpop.permute.xlu1 %499 }
 0x10f   : > { %v342_v8 = vpop.permute.xlu0 %341 }
 0x113   : > { %v344_v10 = vpop.permute.xlu0 %343 }
 0x114   : > { %v338_v11 = vpop.permute.xlu1 %337  ;;  %v346_v12 = vsel %vm345_vm3, %v342_v8, %v344_v10 }
 0x115   : > { %765 = vmatpush3.msk.msra.mxu0 %vm350_vm1, %v346_v12 }
 0x116   : > { %767 = vmatmul.mubr.msk.f32.vlgmr.msra.gmra.mrb[0].mxu0 %vm347_vm2, %v338_v11  ;;  %774 = vmatprep.subr.mxu0 %v1092_v0 }
 0x117   : > { %v502_v13 = vpop.permute.xlu0 %501  ;;  %776 = vmatprep.mubr.msk.f32.mxu0 %vm1093_vm0, %v1092_v0 }
 0x118   : > { %v498_v14 = vpop.permute.xlu1 %497  ;;  %v504_v15 = vsel %vm503_vm4, %v500_v9, %v502_v13 }
 0x119   : > { %775 = vmatpush3.msk.msra.mxu0 %vm350_vm1, %v504_v15 }
 0x11a   : > { %777 = vmatmul.mubr.msk.f32.vlgmr.msra.gmra.mrb[2].mxu0 %vm347_vm2, %v498_v14 }
 0x128   : > { %v583_v22 = vpop.permute.xlu0 %582 }
 0x175   : > { %v493_v16 = vpop.f32.mrb[0].mxu1 }
 0x176   : > { %v773_v17 = vpop.f32.mrb[1].mxu1 }
 0x1e9   : > { %v419_v18 = vpop.f32.mrb[0].mxu0 }
 0x1ea   : > { %v768_v19 = vpop.f32.mrb[1].mxu0  ;;  %v494_v20 = vadd.f32 %v493_v16, %v419_v18 }
 0x1ed   : > { %v575_v21 = vpop.f32.mrb[2].mxu0 }
 0x1ee   : > { %v579_v23 = vadd.f32 %v575_v21, %v494_v20  ;;  %v778_v24 = vpop.f32.mrb[3].mxu0 }
 0x1f0   : > { %v585_v25 = vadd.f32 %v583_v22, %v579_v23 }
 0x1f2   : > { %586 = vst [vmem:[%s327_s18] sm:$0xff] %v585_v25 }
 0x1f3   : > { %1005 = shalt.err (!%p1002_p6)
}
 0x1f4   : > { %s1006_s3 = scalar_lea.hbm %s1374_s4, 128  ;;  %s1010_s7 = scalar_lea.hbm %s1428_s5, 256 }
 0x1f5   : > { %p1007_p1 = scmp.ne.s32.totalorder %s1374_s4, %s1006_s3  ;;  %p1011_p11 = scmp.lt.u32.totalorder %s1374_s4, %s1428_s5 }
 0x1f6   : > { %p1012_p12 = scmp.lt.u32.totalorder %s1010_s7, %s1006_s3  ;;  %p1014_p5 = scmp.lt.u32.totalorder %s1006_s3, %s1374_s4 }
 0x1f7   : > { %p1008_p3 = pnand %p1007_p1, %p1452_p10 }
 0x1f8   : > { %p1013_p0 = por %p1012_p12, %p1011_p11 }
 0x1f9   : > { %p1009_p8 = pneg %p1008_p3 }
 0x1fa   : > { %p1015_p13 = por %p1014_p5, %p1013_p0 }
 0x1fc   : > { %p1016_p9 = pnand %p1015_p13, %p1009_p8 }
 0x1fe   : > { %1019 = shalt.err (!%p1016_p9)
}
 0x1ff   : > { %791 = dma.vmem_to_hbm [thread:$0]  (%p1452_p10), %s1376_s8, 128, %s1374_s4, %s588_s15  }
 0x200 PF: > { %s614_s10 = sand.u32 1, %s1066_s20   ;;  %p1453_p7 = scmp.ne.s32.totalorder %s1437_s28, 0 }
 0x201   : > { %p1454_p2 = scmp.ge.s32.totalorder %s1086_s25, 2  ;;  %s615_s26 = scalar_lea.sflag [#allocation5], %s614_s10 }
 0x203   : > { %p808_p4 = pnand %p1454_p2, %p1453_p7 }
 0x205   : > { %1061 = dma.done.wait (!%p808_p4), %s615_s26, 128  }
 0x206   : > { %1063 = vsyncadd (!%p808_p4), %s615_s26, 4294967168  ;;  %s26_s25 = sadd.s32 1, %s1086_s25   ;;  %s1455_s9 = sld [smem:[#allocation17_spill]] }
 0x207   : > { %p23_p6 = scmp.ge.s32.totalorder %s26_s25, 4   ;;  %s1456_s20 = smov %s1070_s21 }
 0x208   : > { %s1457_s21 = smov %s1074_s22  ;;  %s1458_s22 = smov %s1266_s30 }
 0x209   : > { %s1459_s23 = smov %s1082_s24  ;;  %25 = sbr.rel (!%p23_p6) target bundleno = 13 (0xd), region = 106 }
 0x20c   : > { %s1460_s24 = smov %s1455_s9 }
 0x210   :  { %620 = vsyncpa [#allocation4], 1 }
 0x211   :  { %622 = vsyncpa [#allocation4 + $0x1], 1 }
 0x212   :  { %623 = vsyncpa [#allocation7], 1 }
 0x213   :  { %625 = vsyncpa [#allocation7 + $0x1], 1 }
 0x214   :  { %626 = vsyncpa [#allocation10], 1 }
 0x215   :  { %627 = vsyncpa [#allocation5], 1 }
 0x216   :  { %629 = vsyncpa [#allocation5 + $0x1], 1 }

// kernel: spectral_norm_conv1d_forward.2
= control target key start
LH: loop header
LB: loop body
LE: loop exit
PB: predicated region body
PF: predicated region fallthrough
CT: control target
= control target key end

     0   :  { %9 = vsyncpa [#allocation5], 0  ;;  %s515_s0 = inlined_call_operand.hbm [shape: f32[8,12], index: 0, kind: input, shape index: {}]   ;;  %s516_s1 = inlined_call_operand.hbm [shape: f32[1,8], index: 1, kind: input, shape index: {}]   ;;  %s517_s2 = inlined_call_operand.hbm [shape: f32[1,1], index: 2, kind: output, shape index: {0}]   ;;  %s518_s3 = inlined_call_operand.hbm [shape: f32[1,8], index: 3, kind: output, shape index: {1}]  }
   0x1   :  { %10 = vsyncpa [#allocation8], 0 }
   0x2   :  { %11 = vsyncpa [#allocation6], 0 }
   0x3   :  { %12 = vsyncpa [#allocation11], 0  ;;  %s432_s12 = smov [#allocation4]   ;;  %s433_s14 = smov [#allocation7]  }
   0x4   :  { %s19_s13 = sshll.u32 %s432_s12, 4  ;;  %s29_s15 = sshll.u32 %s433_s14, 4  ;;  %s20_s13 = int_to_ptr.vmem [resolvable:$true] %s19_s13  ;;  %s30_s15 = int_to_ptr.vmem [resolvable:$true] %s29_s15 }
   0x5   :  { %s336_s18 = scalar_lea.hbm %s515_s0, 128 }
   0x6   :  { %p337_p0 = scmp.ne.s32.totalorder %s515_s0, %s336_s18  ;;  %p340_p1 = scmp.lt.u32.totalorder %s336_s18, %s515_s0 }
   0x8   :  { %p342_p2 = pnand %p340_p1, %p337_p0 }
   0xa   :  { %345 = shalt.err (!%p342_p2)
}
   0xb   :  { %s346_s23 = scalar_lea.vmem %s20_s13, 128  ;;  %p351_p4 = scmp.lt.s32.totalorder %s20_s13, %s20_s13 }
   0xc   :  { %p347_p3 = scmp.ne.s32.totalorder %s20_s13, %s346_s23  ;;  %p352_p5 = scmp.lt.s32.totalorder %s346_s23, %s346_s23 }
   0xe   :  { %p353_p6 = por %p352_p5, %p351_p4 }
  0x10   :  { %p354_p7 = pnand %p353_p6, %p347_p3 }
  0x12   :  { %357 = shalt.err (!%p354_p7)
}
  0x13   :  { %22 = dma.hbm_to_vmem [thread:$0]  %s515_s0, 128, %s20_s13, [#allocation5]  }
  0x14   :  { %s358_s28 = scalar_lea.hbm %s516_s1, 16 }
  0x15   :  { %p359_p8 = scmp.ne.s32.totalorder %s516_s1, %s358_s28  ;;  %p362_p9 = scmp.lt.u32.totalorder %s358_s28, %s516_s1 }
  0x17   :  { %p364_p10 = pnand %p362_p9, %p359_p8 }
  0x19   :  { %367 = shalt.err (!%p364_p10)
}
  0x1a   :  { %s368_s6 = scalar_lea.vmem %s30_s15, 16  ;;  %s372_s7 = scalar_lea.vmem %s30_s15, 32 }
  0x1b   :  { %p369_p11 = scmp.ne.s32.totalorder %s30_s15, %s368_s6  ;;  %p373_p12 = scmp.lt.s32.totalorder %s30_s15, %s30_s15 }
  0x1c   :  { %p374_p13 = scmp.lt.s32.totalorder %s372_s7, %s368_s6 }
  0x1e   :  { %p375_p0 = por %p374_p13, %p373_p12 }
  0x20   :  { %p376_p1 = pnand %p375_p0, %p369_p11 }
  0x22   :  { %379 = shalt.err (!%p376_p1)
}
  0x23   :  { %32 = dma.hbm_to_vmem [thread:$0]  %s516_s1, 16, %s30_s15, [#allocation8]  }
  0x24   :  { %424 = dma.done.wait [#allocation5], 128  }
  0x25   :  { %425 = vsyncadd [#allocation5], 4294967168 }
  0x26   :  { %426 = dma.done.wait [#allocation8], 16  }
  0x27   :  { %427 = vsyncadd [#allocation8], 4294967280  ;;  %v434_v0 = vmov 0.0   ;;  %vm435_vm0 = vmmov 0   ;;  %vm141_vm1 = vcmask 97280   ;;  %vm49_vm2 = vcmask 64512  }
  0x28   :  { %306 = vmatprep.subr.mxu0 %v434_v0  ;;  %308 = vmatprep.mubr.msk.f32.mxu0 %vm435_vm0, %v434_v0  ;;  %v47_v1 = vld [vmem:[#allocation4] sm:$0xff]  ;;  %v48_v2 = vld [vmem:[#allocation7] sm:$0x1]  ;;  %vm125_vm3 = vcmask 90112   ;;  %vm45_vm4 = vcmask 0   ;;  %vm43_vm5 = vcmask 57344   ;;  %v233_v25 = vlaneseq }
  0x29   :  { %311 = vmatprep.subr.mxu1 %v434_v0  ;;  %313 = vmatprep.mubr.msk.f32.mxu1 %vm435_vm0, %v434_v0  ;;  %46 = vst.msk [vmem:[#allocation3] sm:$0x1] %vm45_vm4, %v434_v0  ;;  %v436_v7 = vmov 0   ;;  %s437_s10 = smov [#allocation10]  }
  0x2a   :  { %307 = vmatpush3.msra.mxu0 %v47_v1  ;;  %312 = vmatpush3.xpose.msk.msra.mxu1 %vm141_vm1, %v47_v1  ;;  %44 = vst.msk [vmem:[#allocation2] sm:$0x1] %vm43_vm5, %v434_v0  ;;  %v234_v26 = vshrl.u32 %v233_v25, 7  ;;  %s285_s11 = sshll.u32 %s437_s10, 4  ;;  %s286_s11 = int_to_ptr.vmem [resolvable:$true] %s285_s11 }
  0x2b   :  { %309 = vmatmul.mubr.msk.f32.vlgmr.msra.gmra.mrb[0].mxu0 %vm49_vm2, %v48_v2  ;;  %329 = vset.pattern.permute.xlu0 %v436_v7  ;;  %s380_s12 = scalar_lea.vmem %s286_s11, 16  ;;  %s384_s13 = scalar_lea.vmem %s286_s11, 32 }
  0x2c   :  { %v235_v27 = vsub.s32 0, %v234_v26  ;;  %p381_p2 = scmp.ne.s32.totalorder %s286_s11, %s380_s12  ;;  %p385_p3 = scmp.lt.s32.totalorder %s286_s11, %s286_s11 }
  0x2d   :  { %p386_p4 = scmp.lt.s32.totalorder %s384_s13, %s380_s12 }
  0x2f   :  { %p387_p5 = por %p386_p4, %p385_p3 }
  0x30   :  { %v123_v15 = vld [vmem:[#allocation3] sm:$0x1] }
  0x31   :  { %v140_v18 = vld [vmem:[#allocation2] sm:$0x1]  ;;  %p388_p6 = pnand %p387_p5, %p381_p2 }
  0xfe   :  { %v119_v3 = vpop.f32.mrb[0].mxu0 }
  0xff   :  { %v310_v4 = vpop.f32.mrb[1].mxu0  ;;  %314 = vmatmul.mubr.msk.f32.vlgmr.msra.gmra.mrb[0].mxu1 %vm141_vm1, %v119_v3  ;;  %v124_v5 = vmul.f32 %v119_v3, %v119_v3 }
 0x101   :  { %v126_v6 = vsel %vm125_vm3, %v124_v5, 0.0 }
 0x102   :  { %127 = vadd.xlane.f32.xlu0 %v126_v6 }
 0x18f   :  { %v128_v8 = vpop.xlane.xlu0 %127 }
 0x190   :  { %v129_v9 = vrot.slane %v128_v8, 4 }
 0x192   :  { %v130_v10 = vadd.f32 %v129_v9, %v128_v8 }
 0x194   :  { %v131_v11 = vrot.slane %v130_v10, 2 }
 0x196   :  { %v132_v12 = vadd.f32 %v131_v11, %v130_v10 }
 0x198   :  { %v133_v13 = vrot.slane %v132_v12, 1 }
 0x19a   :  { %v134_v14 = vadd.f32 %v133_v13, %v132_v12 }
 0x19c   :  { %316 = vpush %v134_v14 }
 0x1cd   :  { %s317_s1 = spop %316 }
 0x1ce   :  { %v136_v16 = vstv %s317_s1 }
 0x1cf   :  { %v137_v17 = vadd.f32 %v136_v16, %v123_v15 }
 0x1d1   :  { %139 = vst.msk [vmem:[#allocation3] sm:$0x1] %vm45_vm4, %v137_v17 }
 0x1d2   :  { %v214_v19 = vpop.f32.mrb[0].mxu1 }
 0x1d3   :  { %v218_v20 = vadd.f32 %v214_v19, %v140_v18  ;;  %v315_v21 = vpop.f32.mrb[1].mxu1 }
 0x1d5   :  { %220 = vst.msk [vmem:[#allocation2] sm:$0x1] %vm43_vm5, %v218_v20 }
 0x1d8   :  { %v224_v22 = vld [vmem:[#allocation3] sm:$0x1] }
 0x1d9   :  { %v225_v23 = vmax.f32 %v224_v22, 1e-24 }
 0x1db   :  { %330 = vrsqrt.f32 %v225_v23 }
 0x1dc   :  { %v227_v30 = vld [vmem:[#allocation2] sm:$0x1] }
 0x1e5   :  { %v331_v24 = vpop.eup %330 }
 0x1e6   :  { %230 = vperm.xlu0 %329, %v331_v24  }
 0x265   :  { %v231_v28 = vpop.permute.xlu0 %230 }
 0x266   :  { %v236_v29 = vrot.slane %v231_v28, %v235_v27 }
 0x268   :  { %v237_v31 = vmul.f32 %v236_v29, %v227_v30 }
 0x26a   :  { %v238_v32 = vmul.f32 %v237_v31, %v237_v31 }
 0x26c   :  { %v239_v33 = vsel %vm43_vm5, %v238_v32, 0.0 }
 0x26d   :  { %240 = vadd.xlane.f32.xlu1 %v239_v33 }
 0x2fa   :  { %v241_v34 = vpop.xlane.xlu1 %240 }
 0x2fb   :  { %v242_v35 = vrot.slane %v241_v34, 4 }
 0x2fd   :  { %v243_v36 = vadd.f32 %v242_v35, %v241_v34 }
 0x2ff   :  { %v244_v37 = vrot.slane %v243_v36, 2 }
 0x301   :  { %v245_v38 = vadd.f32 %v244_v37, %v243_v36 }
 0x303   :  { %v246_v39 = vrot.slane %v245_v38, 1 }
 0x305   :  { %v247_v40 = vadd.f32 %v246_v39, %v245_v38 }
 0x307   :  { %318 = vpush %v247_v40 }
 0x338   :  { %s319_s9 = spop %318 }
 0x339   :  { %v249_v41 = vstv %s319_s9 }
 0x33a   :  { %v250_v42 = vmax.f32 %v249_v41, 1e-24 }
 0x33c   :  { %332 = vrsqrt.f32 %v250_v42 }
 0x346   :  { %v333_v43 = vpop.eup %332 }
 0x347   :  { %v252_v44 = vmul.f32 %v333_v43, %v237_v31 }
 0x349   :  { %v253_v45 = vmul.f32 %v252_v44, %v237_v31  ;;  %268 = vst.msk [vmem:[#allocation10] sm:$0x1] %vm43_vm5, %v252_v44 }
 0x34b   :  { %v254_v46 = vsel %vm43_vm5, %v253_v45, 0.0 }
 0x34c   :  { %255 = vadd.xlane.f32.xlu1 %v254_v46 }
 0x34d   :  { %391 = shalt.err (!%p388_p6)
}
 0x34e   :  { %s392_s16 = scalar_lea.hbm %s518_s3, 16 }
 0x34f   :  { %p393_p7 = scmp.ne.s32.totalorder %s518_s3, %s392_s16  ;;  %p396_p8 = scmp.lt.u32.totalorder %s392_s16, %s518_s3 }
 0x351   :  { %p398_p9 = pnand %p396_p8, %p393_p7 }
 0x353   :  { %401 = shalt.err (!%p398_p9)
}
 0x354   :  { %288 = dma.vmem_to_hbm [thread:$0]  %s286_s11, 16, %s518_s3, [#allocation11]  }
 0x355   :  { %s438_s24 = smov [#allocation9]  }
 0x356   :  { %s275_s25 = sshll.u32 %s438_s24, 4  ;;  %s276_s25 = int_to_ptr.vmem [resolvable:$true] %s275_s25 }
 0x357   :  { %s402_s26 = scalar_lea.vmem %s276_s25, 16  ;;  %s406_s3 = scalar_lea.vmem %s276_s25, 32 }
 0x358   :  { %p403_p10 = scmp.ne.s32.totalorder %s276_s25, %s402_s26  ;;  %p407_p11 = scmp.lt.s32.totalorder %s276_s25, %s276_s25 }
 0x359   :  { %p408_p12 = scmp.lt.s32.totalorder %s406_s3, %s402_s26 }
 0x35b   :  { %p409_p13 = por %p408_p12, %p407_p11 }
 0x35d   :  { %p410_p0 = pnand %p409_p13, %p403_p10 }
 0x3d9   :  { %v256_v47 = vpop.xlane.xlu1 %255 }
 0x3da   :  { %v257_v48 = vrot.slane %v256_v47, 4 }
 0x3dc   :  { %v258_v49 = vadd.f32 %v257_v48, %v256_v47 }
 0x3de   :  { %v259_v50 = vrot.slane %v258_v49, 2 }
 0x3e0   :  { %v260_v51 = vadd.f32 %v259_v50, %v258_v49 }
 0x3e2   :  { %v261_v52 = vrot.slane %v260_v51, 1 }
 0x3e4   :  { %v262_v53 = vadd.f32 %v261_v52, %v260_v51 }
 0x3e6   :  { %320 = vpush %v262_v53 }
 0x417   :  { %s321_s23 = spop %320 }
 0x418   :  { %v264_v54 = vstv %s321_s23 }
 0x419   :  { %334 = vrcp.f32 %v264_v54 }
 0x423   :  { %v335_v55 = vpop.eup %334 }
 0x424   :  { %267 = vst.msk [vmem:[#allocation9] sm:$0x1] %vm45_vm4, %v335_v55 }
 0x425   :  { %413 = shalt.err (!%p410_p0)
}
 0x426   :  { %s414_s29 = scalar_lea.hbm %s517_s2, 16 }
 0x427   :  { %p415_p1 = scmp.ne.s32.totalorder %s517_s2, %s414_s29  ;;  %p418_p2 = scmp.lt.u32.totalorder %s414_s29, %s517_s2 }
 0x429   :  { %p420_p3 = pnand %p418_p2, %p415_p1 }
 0x42b   :  { %423 = shalt.err (!%p420_p3)
}
 0x42c   :  { %278 = dma.vmem_to_hbm [thread:$0]  %s276_s25, 16, %s517_s2, [#allocation6]  }
 0x42d   :  { %428 = dma.done.wait [#allocation6], 16  }
 0x42e   :  { %429 = vsyncadd [#allocation6], 4294967280 }
 0x42f   :  { %430 = dma.done.wait [#allocation11], 16  }
 0x430   :  { %431 = vsyncadd [#allocation11], 4294967280 }
 0x431   :  { %295 = vsyncpa [#allocation5], 1 }
 0x432   :  { %296 = vsyncpa [#allocation8], 1 }
 0x433   :  { %297 = vsyncpa [#allocation6], 1 }
 0x434   :  { %298 = vsyncpa [#allocation11], 1 }

</bundles_post_ra>
